<compile_context>
chip_gen: v6e
topology: v6e:2x2x1
jax: 0.10.0
libtpu: 0.0.40
codegen_flags: <defaults>
</compile_context>

<pallas_src>
import jax
import jax.numpy as jnp
from jax.experimental import pallas as pl
from jax.experimental.pallas import tpu as pltpu

HIDDEN = 128


def mlp_kernel(x_ref, w1_ref, b1_ref, w2_ref, b2_ref, out_ref):
    # Layer 1: (TB, obs_dim) @ (obs_dim, 128) -> f32 accumulate (MXU).
    h = jnp.dot(x_ref[...], w1_ref[...], preferred_element_type=jnp.float32)
    h = jnp.maximum(h + b1_ref[...], 0.0)                      # bias + ReLU (VPU)
    # Layer 2: (TB, 128) @ (128, num_actions) -> f32; direct unpadded store.
    o = jnp.dot(h, w2_ref[...], preferred_element_type=jnp.float32)
    out_ref[...] = (o + b2_ref[...]).astype(out_ref.dtype)


def _round_up(a, m):
    return (a + m - 1) // m * m


def prepare_params(w1, b1, w2, b2):
    """One-time parameter prep, hoisted out of the per-call forward path."""
    obs_dim, hidden = w1.shape
    hidden2, num_actions = w2.shape
    assert hidden == HIDDEN and hidden2 == HIDDEN
    return (
        w1.astype(jnp.float32),
        b1.reshape(1, hidden).astype(jnp.float32),
        w2.astype(jnp.float32),
        b2.reshape(1, num_actions).astype(jnp.float32),
    )


def dqn_forward(x, params, *, block_batch=4096):
    """x: (batch, obs_dim); params from prepare_params()."""
    w1, b1, w2, b2 = params
    batch, obs_dim = x.shape
    obs_dim_w, hidden = w1.shape
    _, num_actions = w2.shape
    assert obs_dim == obs_dim_w and hidden == HIDDEN

    # Batch tile: large enough to amortize per-grid-step overhead, small
    # enough that grid >= 2 whenever batch allows (v7x megacore sharding).
    tb = min(block_batch, max(8, _round_up(pl.cdiv(batch, 2), 8)))
    grid = (pl.cdiv(batch, tb),)          # ragged last block handled by Pallas

    flops = 2 * batch * (obs_dim * hidden + hidden * num_actions)
    bytes_accessed = (
        batch * obs_dim * 4                       # x read (f32, single pass)
        + (w1.size + b1.size + w2.size + b2.size) * 4
        + batch * num_actions * 4                 # unpadded output writeback
    )

    return pl.pallas_call(
        mlp_kernel,
        out_shape=jax.ShapeDtypeStruct((batch, num_actions), jnp.float32),
        grid=grid,
        in_specs=[
            pl.BlockSpec((tb, obs_dim), lambda i: (i, 0)),          # x (streamed)
            pl.BlockSpec((obs_dim, hidden), lambda i: (0, 0)),      # w1 (resident)
            pl.BlockSpec((1, hidden), lambda i: (0, 0)),            # b1 (resident)
            pl.BlockSpec((hidden, num_actions), lambda i: (0, 0)),  # w2 (resident)
            pl.BlockSpec((1, num_actions), lambda i: (0, 0)),       # b2 (resident)
        ],
        out_specs=pl.BlockSpec((tb, num_actions), lambda i: (i, 0)),
        compiler_params=pltpu.CompilerParams(
            dimension_semantics=("parallel",)),
        cost_estimate=pl.CostEstimate(
            flops=flops, transcendentals=0, bytes_accessed=bytes_accessed),
    )(x.astype(jnp.float32), w1, b1, w2, b2)


def init_params(key, obs_dim, hidden, num_actions):
    # Mimics PyTorch nn.Linear's uniform fan-in init (deterministic).
    k1, k2, k3, k4 = jax.random.split(key, 4)
    bound1 = 1.0 / jnp.sqrt(obs_dim)
    bound2 = 1.0 / jnp.sqrt(hidden)
    w1 = jax.random.uniform(k1, (obs_dim, hidden), jnp.float32, -bound1, bound1)
    b1 = jax.random.uniform(k2, (hidden,), jnp.float32, -bound1, bound1)
    w2 = jax.random.uniform(k3, (hidden, num_actions), jnp.float32, -bound2, bound2)
    b2 = jax.random.uniform(k4, (num_actions,), jnp.float32, -bound2, bound2)
    return w1, b1, w2, b2


if __name__ == "__main__":
    # TODO(synk): the Adam optimizer / device placement in the PyTorch module
    # are training-side state, not part of the forward pass, and not kernels.
    obs_dim = 8        # flat observation, e.g. obs_shape = (8,)
    hidden = HIDDEN    # fixed by the module
    num_actions = 4

    key = jax.random.PRNGKey(0)
    kx, kp, kx2 = jax.random.split(key, 3)
    w1, b1, w2, b2 = init_params(kp, obs_dim, hidden, num_actions)
    params = prepare_params(w1, b1, w2, b2)

    def ref_fn(x):
        return jnp.maximum(x @ w1 + b1.reshape(1, -1), 0.0) @ w2 + b2.reshape(1, -1)

    # Small batch (fits a single block).
    x = jax.random.normal(kx, (2, obs_dim), jnp.float32)
    out = jax.block_until_ready(dqn_forward(x, params))
    assert out.shape == (2, num_actions)
    assert jnp.allclose(out, ref_fn(x), atol=1e-4, rtol=1e-4), (out, ref_fn(x))

    # Non-divisible batch exercising the ragged last block + multi-step grid.
    x2 = jax.random.normal(kx2, (37, obs_dim), jnp.float32)
    out2 = jax.block_until_ready(dqn_forward(x2, params))
    assert out2.shape == (37, num_actions)
    assert jnp.allclose(out2, ref_fn(x2), atol=1e-4, rtol=1e-4)

    print("KERNEL_OK")
</pallas_src>

<mosaic_0001>
module attributes {stable_mosaic.version = 11 : i64} {
  func.func @mlp_kernel(%arg0: i32, %arg1: memref<8x8xf32, #tpu.memory_space<vmem>>, %arg2: memref<8x128xf32, #tpu.memory_space<vmem>>, %arg3: memref<1x128xf32, #tpu.memory_space<vmem>>, %arg4: memref<128x4xf32, #tpu.memory_space<vmem>>, %arg5: memref<1x4xf32, #tpu.memory_space<vmem>>, %arg6: memref<8x4xf32, #tpu.memory_space<vmem>>) attributes {dimension_semantics = [#tpu.dimension_semantics<parallel>], iteration_bounds = array<i64: 1>, scalar_prefetch = 0 : i64, scratch_operands = 0 : i64, tpu.core_type = #tpu.core_type<tc>, window_params = [{transform_indices = @transform_0, window_bounds = array<i64: 8, 8>}, {pipeline_mode = #tpu.pipeline_mode<synchronous>, transform_indices = @transform_1, window_bounds = array<i64: 8, 128>}, {pipeline_mode = #tpu.pipeline_mode<synchronous>, transform_indices = @transform_2, window_bounds = array<i64: 1, 128>}, {pipeline_mode = #tpu.pipeline_mode<synchronous>, transform_indices = @transform_3, window_bounds = array<i64: 128, 4>}, {pipeline_mode = #tpu.pipeline_mode<synchronous>, transform_indices = @transform_4, window_bounds = array<i64: 1, 4>}, {transform_indices = @transform_5, window_bounds = array<i64: 8, 4>}]} {
    %c0 = arith.constant 0 : index
    %c0_0 = arith.constant 0 : index
    %0 = vector.load %arg1[%c0, %c0_0] : memref<8x8xf32, #tpu.memory_space<vmem>>, vector<8x8xf32>
    %c0_1 = arith.constant 0 : index
    %c0_2 = arith.constant 0 : index
    %1 = vector.load %arg2[%c0_1, %c0_2] : memref<8x128xf32, #tpu.memory_space<vmem>>, vector<8x128xf32>
    %cst = arith.constant dense<0.000000e+00> : vector<8x128xf32>
    %2 = tpu.matmul %0, %1, %cst {dimension_numbers = #tpu.dot_dimension_numbers<[1], [0], [0], [1], [0, 0, 1, 1], [], []>} : vector<8x8xf32>, vector<8x128xf32>, vector<8x128xf32> -> vector<8x128xf32>
    %c0_3 = arith.constant 0 : index
    %c0_4 = arith.constant 0 : index
    %3 = vector.load %arg3[%c0_3, %c0_4] : memref<1x128xf32, #tpu.memory_space<vmem>>, vector<1x128xf32>
    %4 = vector.broadcast %3 : vector<1x128xf32> to vector<8x128xf32>
    %5 = arith.addf %2, %4 : vector<8x128xf32>
    %cst_5 = arith.constant 0.000000e+00 : f32
    %6 = vector.broadcast %cst_5 : f32 to vector<8x128xf32>
    %7 = arith.maximumf %5, %6 : vector<8x128xf32>
    %c0_6 = arith.constant 0 : index
    %c0_7 = arith.constant 0 : index
    %8 = vector.load %arg4[%c0_6, %c0_7] : memref<128x4xf32, #tpu.memory_space<vmem>>, vector<128x4xf32>
    %cst_8 = arith.constant dense<0.000000e+00> : vector<8x4xf32>
    %9 = tpu.matmul %7, %8, %cst_8 {dimension_numbers = #tpu.dot_dimension_numbers<[1], [0], [0], [1], [0, 0, 1, 1], [], []>} : vector<8x128xf32>, vector<128x4xf32>, vector<8x4xf32> -> vector<8x4xf32>
    %c0_9 = arith.constant 0 : index
    %c0_10 = arith.constant 0 : index
    %10 = vector.load %arg5[%c0_9, %c0_10] : memref<1x4xf32, #tpu.memory_space<vmem>>, vector<1x4xf32>
    %11 = vector.broadcast %10 : vector<1x4xf32> to vector<8x4xf32>
    %12 = arith.addf %9, %11 : vector<8x4xf32>
    %c0_11 = arith.constant 0 : index
    %c0_12 = arith.constant 0 : index
    %13 = vector.load %arg6[%c0_11, %c0_12] : memref<8x4xf32, #tpu.memory_space<vmem>>, vector<8x4xf32>
    tpu.vector_store %arg6[%c0_11, %c0_12], %12 {strides = array<i32>} : memref<8x4xf32, #tpu.memory_space<vmem>>, vector<8x4xf32>,
    return
  }
  func.func @transform_0(%arg0: i32) -> (i32, i32) {
    %c0_i32 = arith.constant 0 : i32
    %c0_i32_0 = arith.constant 0 : i32
    return %arg0, %c0_i32 : i32, i32
  }
  func.func @transform_1(%arg0: i32) -> (i32, i32) {
    %c0_i32 = arith.constant 0 : i32
    %c0_i32_0 = arith.constant 0 : i32
    %c0_i32_1 = arith.constant 0 : i32
    return %c0_i32, %c0_i32_0 : i32, i32
  }
  func.func @transform_2(%arg0: i32) -> (i32, i32) {
    %c0_i32 = arith.constant 0 : i32
    %c0_i32_0 = arith.constant 0 : i32
    %c0_i32_1 = arith.constant 0 : i32
    return %c0_i32, %c0_i32_0 : i32, i32
  }
  func.func @transform_3(%arg0: i32) -> (i32, i32) {
    %c0_i32 = arith.constant 0 : i32
    %c0_i32_0 = arith.constant 0 : i32
    %c0_i32_1 = arith.constant 0 : i32
    return %c0_i32, %c0_i32_0 : i32, i32
  }
  func.func @transform_4(%arg0: i32) -> (i32, i32) {
    %c0_i32 = arith.constant 0 : i32
    %c0_i32_0 = arith.constant 0 : i32
    %c0_i32_1 = arith.constant 0 : i32
    return %c0_i32, %c0_i32_0 : i32, i32
  }
  func.func @transform_5(%arg0: i32) -> (i32, i32) {
    %c0_i32 = arith.constant 0 : i32
    %c0_i32_0 = arith.constant 0 : i32
    return %arg0, %c0_i32 : i32, i32
  }
}

</mosaic_0001>

<bundles_post_ra>
// kernel: tpu_custom_call.1
= control target key start
LH: loop header
LB: loop body
LE: loop exit
PB: predicated region body
PF: predicated region fallthrough
CT: control target
= control target key end

     0   :  { %10 = vsyncpa [#allocation3], 0  ;;  %v305_v2 = vmov 0.0   ;;  %vm306_vm0 = vmmov 0   ;;  %vm30_vm1 = vcmask 64512   ;;  %vm198_vm2 = vcmask 31744   ;;  %s403_s0 = inlined_call_operand.vmem [shape: f32[2,8], index: 0, kind: input, shape index: {}]   ;;  %s404_s1 = inlined_call_operand.vmem [shape: f32[8,128], index: 1, kind: input, shape index: {}]   ;;  %s405_s2 = inlined_call_operand.vmem [shape: f32[1,128], index: 2, kind: input, shape index: {}]   ;;  %s406_s3 = inlined_call_operand.vmem [shape: f32[128,4], index: 3, kind: input, shape index: {}]   ;;  %s407_s4 = inlined_call_operand.vmem [shape: f32[1,4], index: 4, kind: input, shape index: {}]   ;;  %s408_s5 = inlined_call_operand.hbm [shape: f32[2,4], index: 5, kind: output, shape index: {}]  }
   0x1   :  { %v22_v0 = vld [vmem:[%s404_s1] sm:$0xff]  ;;  %238 = vmatprep.subr.mxu0 %v305_v2  ;;  %240 = vmatprep.mubr.msk.f32.mxu0 %vm306_vm0, %v305_v2  ;;  %v120_v3 = vld [vmem:[%s406_s3 + $0x78] sm:$0xff]  ;;  %v119_v4 = vld [vmem:[%s406_s3 + $0x70] sm:$0xff] }
   0x2   :  { %v21_v1 = vld [vmem:[%s403_s0] sm:$0xff]  ;;  %239 = vmatpush3.msra.mxu0 %v22_v0  ;;  %243 = vmatprep.subr.mxu1 %v305_v2  ;;  %v118_v5 = vld [vmem:[%s406_s3 + $0x68] sm:$0xff]  ;;  %v116_v7 = vld [vmem:[%s406_s3 + $0x58] sm:$0xff] }
   0x3   :  { %241 = vmatmul.mubr.msk.f32.vlgmr.msra.gmra.mxu0 %vm30_vm1, %v21_v1  ;;  %244 = vmatpush3.msra.mxu1 %v120_v3  ;;  %v117_v6 = vld [vmem:[%s406_s3 + $0x60] sm:$0xff]  ;;  %v115_v8 = vld [vmem:[%s406_s3 + $0x50] sm:$0xff]  ;;  %v114_v9 = vld [vmem:[%s406_s3 + $0x48] sm:$0xff] }
   0x4   :  { %245 = vmatprep.subr.mxu1 %v305_v2  ;;  %275 = vmatprep.mubr.msk.f32.mxu1 %vm306_vm0, %v305_v2  ;;  %v113_v10 = vld [vmem:[%s406_s3 + $0x40] sm:$0xff]  ;;  %v112_v11 = vld [vmem:[%s406_s3 + $0x38] sm:$0xff]  ;;  %v111_v12 = vld [vmem:[%s406_s3 + $0x30] sm:$0xff] }
   0x5   :  { %246 = vmatpush3.msra.mxu1 %v119_v4  ;;  %v110_v13 = vld [vmem:[%s406_s3 + $0x28] sm:$0xff]  ;;  %v109_v14 = vld [vmem:[%s406_s3 + $0x20] sm:$0xff]  ;;  %v108_v15 = vld [vmem:[%s406_s3 + $0x18] sm:$0xff] }
   0x6   :  { %247 = vmatprep.subr.mxu1 %v305_v2  ;;  %v107_v16 = vld [vmem:[%s406_s3 + $0x10] sm:$0xff]  ;;  %v106_v17 = vld [vmem:[%s406_s3 + $0x8] sm:$0xff]  ;;  %v105_v18 = vld [vmem:[%s406_s3] sm:$0xff] }
   0x7   :  { %248 = vmatpush3.msra.mxu1 %v118_v5  ;;  %v216_v19 = vld [vmem:[%s405_s2] ss:$0 sm:$0xff] }
   0x8   :  { %249 = vmatprep.subr.mxu1 %v305_v2  ;;  %v218_v24 = vld [vmem:[%s407_s4] ss:$0 sm:$0xff] }
   0x9   :  { %250 = vmatpush3.msra.mxu1 %v117_v6 }
   0xa   :  { %251 = vmatprep.subr.mxu1 %v305_v2 }
   0xb   :  { %252 = vmatpush3.msra.mxu1 %v116_v7 }
   0xc   :  { %253 = vmatprep.subr.mxu1 %v305_v2 }
   0xd   :  { %254 = vmatpush3.msra.mxu1 %v115_v8 }
   0xe   :  { %255 = vmatprep.subr.mxu1 %v305_v2 }
   0xf   :  { %256 = vmatpush3.msra.mxu1 %v114_v9 }
  0x10   :  { %257 = vmatprep.subr.mxu1 %v305_v2 }
  0x11   :  { %258 = vmatpush3.msra.mxu1 %v113_v10 }
  0x12   :  { %259 = vmatprep.subr.mxu1 %v305_v2 }
  0x13   :  { %260 = vmatpush3.msra.mxu1 %v112_v11 }
  0x14   :  { %261 = vmatprep.subr.mxu1 %v305_v2 }
  0x15   :  { %262 = vmatpush3.msra.mxu1 %v111_v12 }
  0x16   :  { %263 = vmatprep.subr.mxu1 %v305_v2 }
  0x17   :  { %264 = vmatpush3.msra.mxu1 %v110_v13 }
  0x18   :  { %265 = vmatprep.subr.mxu1 %v305_v2 }
  0x19   :  { %266 = vmatpush3.msra.mxu1 %v109_v14 }
  0x1a   :  { %267 = vmatprep.subr.mxu1 %v305_v2 }
  0x1b   :  { %268 = vmatpush3.msra.mxu1 %v108_v15 }
  0x1c   :  { %269 = vmatprep.subr.mxu1 %v305_v2 }
  0x1d   :  { %270 = vmatpush3.msra.mxu1 %v107_v16 }
  0x1e   :  { %271 = vmatprep.subr.mxu1 %v305_v2 }
  0x1f   :  { %272 = vmatpush3.msra.mxu1 %v106_v17 }
  0x20   :  { %273 = vmatprep.subr.mxu1 %v305_v2 }
  0x21   :  { %274 = vmatpush3.msra.mxu1 %v105_v18 }
  0xc3   :  { %v100_v20 = vpop.f32.mrf.mxu0 }
  0xc4   :  { %v101_v21 = vadd.f32 %v216_v19, %v100_v20 }
  0xc5   :  { %v242_v22 = vpop.f32.mrf.mxu0 }
  0xc6   :  { %v104_v23 = vmax.f32 %v101_v21, 0.0 }
  0xc8   :  { %276 = vmatmul.mubr.f32.vlgmr.msra.gmra.mxu1 %v104_v23 }
 0x188   :  { %v194_v25 = vpop.f32.mrf.mxu1 }
 0x189   :  { %v195_v26 = vadd.f32 %v218_v24, %v194_v25 }
 0x18a   :  { %v277_v27 = vpop.f32.mrf.mxu1 }
 0x18b   :  { %199 = vst.msk [vmem:[#allocation2] sm:$0xff] %vm198_vm2, %v195_v26 }
 0x18c   :  { %204 = vsyncadd [#allocation3], 96  ;;  %s307_s3 = smov [#allocation2]  }
 0x18d   :  { %s205_s29 = sshll.u32 %s307_s3, 4  ;;  %s206_s29 = int_to_ptr.vmem [resolvable:$true] %s205_s29 }
 0x18e   :  { %s283_s30 = scalar_lea.vmem %s206_s29, 32  ;;  %s287_s2 = scalar_lea.vmem %s206_s29, 128 }
 0x18f   :  { %p284_p0 = scmp.ne.s32.totalorder %s206_s29, %s283_s30  ;;  %p288_p1 = scmp.lt.s32.totalorder %s206_s29, %s206_s29 }
 0x190   :  { %p289_p2 = scmp.lt.s32.totalorder %s287_s2, %s283_s30 }
 0x192   :  { %p290_p3 = por %p289_p2, %p288_p1 }
 0x194   :  { %p291_p4 = pnand %p290_p3, %p284_p0 }
 0x196   :  { %294 = shalt.err (!%p291_p4)
}
 0x197   :  { %s308_s6 = smov 32   ;;  %s309_s7 = smov 2  }
 0x198   :  { %211 = dma.vmem_to_hbm [thread:$0]  %s206_s29, 32, %s408_s5, [#allocation3], %s308_s6, %s308_s6, %s309_s7  }
 0x199   :  { %303 = dma.done.wait [#allocation3], 128  }
 0x19a   :  { %304 = vsyncadd [#allocation3], 4294967168 }
 0x19b   :  { %215 = vsyncpa [#allocation3], 1 }

</bundles_post_ra>
